<compile_context>
chip_gen: v6e
topology: v6e:2x2x1
jax: 0.10.0
libtpu: 0.0.40
codegen_flags: <defaults>
</compile_context>

<pallas_src>
import functools
import math

import jax
import jax.numpy as jnp
from jax import lax
from jax.experimental import pallas as pl
from jax.experimental.pallas import tpu as pltpu


def _round_up(x, m):
    return ((x + m - 1) // m) * m


def _dense(x, w, b):
    """y = x @ w + b. Tiny-K layers go to the VPU (broadcast FMAs) instead of the MXU."""
    k = w.shape[0]
    if k <= 4:
        y = b
        for j in range(k):
            y = y + x[:, j:j + 1] * w[j:j + 1, :]
        return y
    return lax.dot_general(x, w, (((1,), (0,)), ((), ())),
                           preferred_element_type=jnp.float32) + b


def _mlp(x, params, n_layers):
    # MLP.forward: tanh on all layers except the last.
    for li in range(n_layers):
        x = _dense(x, params[2 * li][...], params[2 * li + 1][...])
        if li < n_layers - 1:
            x = jnp.tanh(x)
    return x


def _branch_kernel(n_layers, u0_ref, *refs):
    """Branch MLP: (B_pad, n_x) -> (B_pad, latent_pad). Single block, computed once."""
    params = refs[:2 * n_layers]
    out_ref = refs[2 * n_layers]
    out_ref[...] = _mlp(u0_ref[...], params, n_layers)


def _trunk_bilinear_kernel(n_layers, branch_ref, grid_ref, *refs):
    """Per N-tile: trunk MLP on the tile, then einsum('bl,nl->bn') via dot_general."""
    params = refs[:2 * n_layers]
    out_ref = refs[2 * n_layers]
    trunk = _mlp(grid_ref[...], params, n_layers)          # (tile_n, latent_pad)
    # Contract both last dims -> (B_pad, tile_n); no explicit transpose (no XLU pass).
    out_ref[...] = lax.dot_general(branch_ref[...], trunk,
                                   (((1,), (1,)), ((), ())),
                                   preferred_element_type=jnp.float32)


def _init_linear(key, fan_in, fan_out):
    """Deterministic PyTorch-style (uniform +-1/sqrt(fan_in)) init, stored (in, out)."""
    kw, kb = jax.random.split(key)
    bound = 1.0 / float(fan_in) ** 0.5
    w = jax.random.uniform(kw, (fan_in, fan_out), minval=-bound, maxval=bound,
                           dtype=jnp.float32)
    b = jax.random.uniform(kb, (1, fan_out), minval=-bound, maxval=bound,
                           dtype=jnp.float32)
    return w, b


def _pad_cols(a, to_cols):
    pad = to_cols - a.shape[-1]
    return a if pad == 0 else jnp.pad(a, ((0, 0), (0, pad)))


class DeepONetPallas:
    def __init__(self, branch_layers, trunk_layers, output_shape, key):
        assert branch_layers[-1] == trunk_layers[-1], "latent dims must match"
        self.output_shape = tuple(output_shape)
        self.n_branch = len(branch_layers) - 1
        self.n_trunk = len(trunk_layers) - 1
        self.latent = branch_layers[-1]
        self.latent_pad = _round_up(self.latent, 128)   # lane-dense latent

        keys = jax.random.split(key, self.n_branch + self.n_trunk)

        def build(sizes, ks):
            params = []
            n = len(sizes) - 1
            for i in range(n):
                w, b = _init_linear(ks[i], sizes[i], sizes[i + 1])
                if i == n - 1:
                    # Zero-pad the latent (output) columns of the final layer: padded
                    # columns of branch_out/trunk_out are exactly 0 -> bilinear unchanged.
                    w = _pad_cols(w, self.latent_pad)
                    b = _pad_cols(b, self.latent_pad)
                params += [w, b]
            return params

        self.branch_params = build(branch_layers, keys[:self.n_branch])
        self.trunk_params = build(trunk_layers, keys[self.n_branch:])
        # Layer widths with the padded latent (for the cost estimate).
        self.trunk_dims = list(trunk_layers[:-1]) + [self.latent_pad]

    def __call__(self, u0, grid):
        # u0: (batch, 1, n_x) -> flatten(start_dim=1) -> (batch, n_x)
        batch = u0.shape[0]
        u0_flat = u0.reshape(batch, -1).astype(jnp.float32)
        grid = grid.astype(jnp.float32)
        n_points = grid.shape[0]
        assert n_points == math.prod(self.output_shape), \
            "grid rows must equal prod(output_shape)"

        # --- padding for sublane / lane density ---
        b_pad = _round_up(batch, 8)                   # sublane alignment
        tile_n = 512 if n_points >= 512 else 128      # 128-granular, lane-dense N tiles
        n_pad = _round_up(n_points, tile_n)
        u0_p = jnp.pad(u0_flat, ((0, b_pad - batch), (0, 0)))
        grid_p = jnp.pad(grid, ((0, n_pad - n_points), (0, 0)))

        vmem = pl.BlockSpec(memory_space=pltpu.MemorySpace.VMEM)

        # --- branch MLP: computed exactly once in a tiny single-block call ---
        branch_out = pl.pallas_call(
            functools.partial(_branch_kernel, self.n_branch),
            out_shape=jax.ShapeDtypeStruct((b_pad, self.latent_pad), jnp.float32),
            in_specs=[vmem] * (1 + 2 * self.n_branch),
            out_specs=vmem,
        )(u0_p, *self.branch_params)

        # --- trunk MLP + bilinear, tiled over the point dimension ---
        num_tiles = n_pad // tile_n
        resident = lambda shape: pl.BlockSpec(shape, lambda i: (0, 0))
        in_specs = [resident((b_pad, self.latent_pad)),                        # branch_out
                    pl.BlockSpec((tile_n, grid_p.shape[1]), lambda i: (i, 0))]  # grid tile
        for p in self.trunk_params:                                            # resident
            in_specs.append(resident(p.shape))
        out_spec = pl.BlockSpec((b_pad, tile_n), lambda i: (0, i))

        dims = self.trunk_dims
        mlp_flops = 2 * n_pad * sum(dims[i] * dims[i + 1] for i in range(self.n_trunk))
        bil_flops = 2 * b_pad * self.latent_pad * n_pad
        transcendentals = n_pad * sum(dims[1:-1])       # tanh on hidden layers
        bytes_accessed = 4 * (grid_p.size + branch_out.size + b_pad * n_pad
                              + sum(int(p.size) for p in self.trunk_params))

        out_pad = pl.pallas_call(
            functools.partial(_trunk_bilinear_kernel, self.n_trunk),
            out_shape=jax.ShapeDtypeStruct((b_pad, n_pad), jnp.float32),
            grid=(num_tiles,),
            in_specs=in_specs,
            out_specs=out_spec,
            compiler_params=pltpu.CompilerParams(
                dimension_semantics=("parallel",),
                vmem_limit_bytes=32 * 1024 * 1024),
            cost_estimate=pl.CostEstimate(
                flops=int(mlp_flops + bil_flops),
                transcendentals=int(transcendentals),
                bytes_accessed=int(bytes_accessed)),
        )(branch_out, grid_p, *self.trunk_params)

        out = out_pad[:batch, :n_points]
        return out.reshape((batch,) + self.output_shape)

    # pure-JAX reference for correctness checking (padded latent cols are all-zero,
    # so the einsum over latent_pad is identical to the unpadded module)
    def reference(self, u0, grid):
        def mlp(x, params, n_layers):
            for li in range(n_layers):
                x = x @ params[2 * li] + params[2 * li + 1]
                if li < n_layers - 1:
                    x = jnp.tanh(x)
            return x

        batch = u0.shape[0]
        b = mlp(u0.reshape(batch, -1).astype(jnp.float32),
                self.branch_params, self.n_branch)
        t = mlp(grid.astype(jnp.float32), self.trunk_params, self.n_trunk)
        out = jnp.einsum('bi,ni->bn', b, t)
        return out.reshape((batch,) + self.output_shape)


if __name__ == "__main__":
    key = jax.random.PRNGKey(0)
    k_params, k_u0, k_grid = jax.random.split(key, 3)

    # Small shapes consistent with the module's forward contract:
    #   branch input (batch, 1, n_x), trunk input (n_x * n_t, 2)
    batch = 2
    n_x = 8
    n_t = 8
    latent_dim = 32
    output_shape = (n_t, n_x)                 # n_t * n_x == trunk rows

    branch_layers = [n_x, 32, 32, latent_dim]
    trunk_layers = [2, 32, 32, latent_dim]

    model = DeepONetPallas(branch_layers, trunk_layers, output_shape, k_params)

    u0 = jax.random.normal(k_u0, (batch, 1, n_x), dtype=jnp.float32)
    grid = jax.random.normal(k_grid, (n_x * n_t, 2), dtype=jnp.float32)

    out = model(u0, grid)
    out = jax.block_until_ready(out)

    ref = model.reference(u0, grid)
    assert out.shape == (batch,) + output_shape, out.shape
    assert jnp.allclose(out, ref, atol=1e-4, rtol=1e-4), \
        float(jnp.max(jnp.abs(out - ref)))

    print("KERNEL_OK")
</pallas_src>

<mosaic_0001>
module attributes {stable_mosaic.version = 11 : i64} {
  func.func @_branch_kernel(%arg0: memref<8x8xf32, #tpu.memory_space<vmem>>, %arg1: memref<8x32xf32, #tpu.memory_space<vmem>>, %arg2: memref<1x32xf32, #tpu.memory_space<vmem>>, %arg3: memref<32x32xf32, #tpu.memory_space<vmem>>, %arg4: memref<1x32xf32, #tpu.memory_space<vmem>>, %arg5: memref<32x128xf32, #tpu.memory_space<vmem>>, %arg6: memref<1x128xf32, #tpu.memory_space<vmem>>, %arg7: memref<8x128xf32, #tpu.memory_space<vmem>>) attributes {dimension_semantics = [], scalar_prefetch = 0 : i64, scratch_operands = 0 : i64, tpu.core_type = #tpu.core_type<tc>} {
    %c0 = arith.constant 0 : index
    %c0_0 = arith.constant 0 : index
    %0 = vector.load %arg0[%c0, %c0_0] : memref<8x8xf32, #tpu.memory_space<vmem>>, vector<8x8xf32>
    %c0_1 = arith.constant 0 : index
    %c0_2 = arith.constant 0 : index
    %1 = vector.load %arg1[%c0_1, %c0_2] : memref<8x32xf32, #tpu.memory_space<vmem>>, vector<8x32xf32>
    %c0_3 = arith.constant 0 : index
    %c0_4 = arith.constant 0 : index
    %2 = vector.load %arg2[%c0_3, %c0_4] : memref<1x32xf32, #tpu.memory_space<vmem>>, vector<1x32xf32>
    %cst = arith.constant dense<0.000000e+00> : vector<8x32xf32>
    %3 = tpu.matmul %0, %1, %cst {dimension_numbers = #tpu.dot_dimension_numbers<[1], [0], [0], [1], [0, 0, 1, 1], [], []>} : vector<8x8xf32>, vector<8x32xf32>, vector<8x32xf32> -> vector<8x32xf32>
    %4 = vector.broadcast %2 : vector<1x32xf32> to vector<8x32xf32>
    %5 = arith.addf %3, %4 : vector<8x32xf32>
    %6 = math.tanh %5 : vector<8x32xf32>
    %c0_5 = arith.constant 0 : index
    %c0_6 = arith.constant 0 : index
    %7 = vector.load %arg3[%c0_5, %c0_6] : memref<32x32xf32, #tpu.memory_space<vmem>>, vector<32x32xf32>
    %c0_7 = arith.constant 0 : index
    %c0_8 = arith.constant 0 : index
    %8 = vector.load %arg4[%c0_7, %c0_8] : memref<1x32xf32, #tpu.memory_space<vmem>>, vector<1x32xf32>
    %cst_9 = arith.constant dense<0.000000e+00> : vector<8x32xf32>
    %9 = tpu.matmul %6, %7, %cst_9 {dimension_numbers = #tpu.dot_dimension_numbers<[1], [0], [0], [1], [0, 0, 1, 1], [], []>} : vector<8x32xf32>, vector<32x32xf32>, vector<8x32xf32> -> vector<8x32xf32>
    %10 = vector.broadcast %8 : vector<1x32xf32> to vector<8x32xf32>
    %11 = arith.addf %9, %10 : vector<8x32xf32>
    %12 = math.tanh %11 : vector<8x32xf32>
    %c0_10 = arith.constant 0 : index
    %c0_11 = arith.constant 0 : index
    %13 = vector.load %arg5[%c0_10, %c0_11] : memref<32x128xf32, #tpu.memory_space<vmem>>, vector<32x128xf32>
    %c0_12 = arith.constant 0 : index
    %c0_13 = arith.constant 0 : index
    %14 = vector.load %arg6[%c0_12, %c0_13] : memref<1x128xf32, #tpu.memory_space<vmem>>, vector<1x128xf32>
    %cst_14 = arith.constant dense<0.000000e+00> : vector<8x128xf32>
    %15 = tpu.matmul %12, %13, %cst_14 {dimension_numbers = #tpu.dot_dimension_numbers<[1], [0], [0], [1], [0, 0, 1, 1], [], []>} : vector<8x32xf32>, vector<32x128xf32>, vector<8x128xf32> -> vector<8x128xf32>
    %16 = vector.broadcast %14 : vector<1x128xf32> to vector<8x128xf32>
    %17 = arith.addf %15, %16 : vector<8x128xf32>
    %c0_15 = arith.constant 0 : index
    %c0_16 = arith.constant 0 : index
    %18 = vector.load %arg7[%c0_15, %c0_16] : memref<8x128xf32, #tpu.memory_space<vmem>>, vector<8x128xf32>
    tpu.vector_store %arg7[%c0_15, %c0_16], %17 {strides = array<i32>} : memref<8x128xf32, #tpu.memory_space<vmem>>, vector<8x128xf32>,
    return
  }
}

</mosaic_0001>

<bundles_post_ra>
// kernel: tpu_custom_call.1
= control target key start
LH: loop header
LB: loop body
LE: loop exit
PB: predicated region body
PF: predicated region fallthrough
CT: control target
= control target key end

     0   :  { %12 = vsyncpa [#allocation3], 0  ;;  %s591_s0 = inlined_call_operand.hbm [shape: f32[8,8], index: 0, kind: input, shape index: {}]   ;;  %s592_s1 = inlined_call_operand.hbm [shape: f32[8,32], index: 1, kind: input, shape index: {}]   ;;  %s593_s2 = inlined_call_operand.vmem [shape: f32[1,32], index: 2, kind: input, shape index: {}]   ;;  %s594_s3 = inlined_call_operand.hbm [shape: f32[32,32], index: 3, kind: input, shape index: {}]   ;;  %s595_s4 = inlined_call_operand.vmem [shape: f32[1,32], index: 4, kind: input, shape index: {}]   ;;  %s596_s5 = inlined_call_operand.hbm [shape: f32[32,128], index: 5, kind: input, shape index: {}]   ;;  %s597_s6 = inlined_call_operand.vmem [shape: f32[1,128], index: 6, kind: input, shape index: {}]   ;;  %s598_s7 = inlined_call_operand.hbm [shape: f32[8,128], index: 7, kind: output, shape index: {}]  }
   0x1   :  { %13 = vsyncpa [#allocation6], 0 }
   0x2   :  { %14 = vsyncpa [#allocation9], 0 }
   0x3   :  { %15 = vsyncpa [#allocation4], 0  ;;  %s516_s24 = smov [#allocation5]   ;;  %s517_s26 = smov [#allocation2]  }
   0x4   :  { %s32_s25 = sshll.u32 %s516_s24, 4  ;;  %s22_s27 = sshll.u32 %s517_s26, 4  ;;  %s33_s25 = int_to_ptr.vmem [resolvable:$true] %s32_s25  ;;  %s23_s27 = int_to_ptr.vmem [resolvable:$true] %s22_s27 }
   0x5   :  { %s416_s28 = scalar_lea.vmem %s33_s25, 128  ;;  %p421_p1 = scmp.lt.s32.totalorder %s33_s25, %s33_s25 }
   0x6   :  { %p417_p0 = scmp.ne.s32.totalorder %s33_s25, %s416_s28  ;;  %p422_p2 = scmp.lt.s32.totalorder %s416_s28, %s416_s28 }
   0x8   :  { %p423_p3 = por %p422_p2, %p421_p1 }
   0xa   :  { %p424_p4 = pnand %p423_p3, %p417_p0 }
   0xc   :  { %427 = shalt.err (!%p424_p4)
}
   0xd   :  { %35 = dma.hbm_to_vmem [thread:$0]  %s592_s1, 128, %s33_s25, [#allocation6]  }
   0xe   :  { %s436_s8 = scalar_lea.vmem %s23_s27, 128  ;;  %p441_p6 = scmp.lt.s32.totalorder %s23_s27, %s23_s27 }
   0xf   :  { %p437_p5 = scmp.ne.s32.totalorder %s23_s27, %s436_s8  ;;  %p442_p7 = scmp.lt.s32.totalorder %s436_s8, %s436_s8 }
  0x11   :  { %p443_p8 = por %p442_p7, %p441_p6 }
  0x13   :  { %p444_p9 = pnand %p443_p8, %p437_p5 }
  0x15   :  { %447 = shalt.err (!%p444_p9)
}
  0x16   :  { %25 = dma.hbm_to_vmem [thread:$0]  %s591_s0, 128, %s23_s27, [#allocation3]  }
  0x17   :  { %s518_s11 = smov [#allocation7]  }
  0x18   :  { %s43_s12 = sshll.u32 %s518_s11, 4  ;;  %s44_s12 = int_to_ptr.vmem [resolvable:$true] %s43_s12 }
  0x19   :  { %s456_s13 = scalar_lea.vmem %s44_s12, 512  ;;  %p461_p11 = scmp.lt.s32.totalorder %s44_s12, %s44_s12 }
  0x1a   :  { %p457_p10 = scmp.ne.s32.totalorder %s44_s12, %s456_s13  ;;  %p462_p12 = scmp.lt.s32.totalorder %s456_s13, %s456_s13 }
  0x1c   :  { %p463_p13 = por %p462_p12, %p461_p11 }
  0x1e   :  { %p464_p0 = pnand %p463_p13, %p457_p10 }
  0x20   :  { %467 = shalt.err (!%p464_p0)
}
  0x21   :  { %s519_s1 = smov 128   ;;  %s520_s14 = smov 8  }
  0x22   :  { %49 = dma.hbm_to_vmem [thread:$0]  %s594_s3, 512, %s44_s12, [#allocation6], %s519_s1, %s519_s1, %s520_s14  }
  0x23   :  { %s521_s17 = smov [#allocation8]  }
  0x24   :  { %s57_s18 = sshll.u32 %s521_s17, 4  ;;  %s58_s18 = int_to_ptr.vmem [resolvable:$true] %s57_s18 }
  0x25   :  { %s476_s0 = scalar_lea.vmem %s58_s18, 512  ;;  %p481_p2 = scmp.lt.s32.totalorder %s58_s18, %s58_s18 }
  0x26   :  { %p477_p1 = scmp.ne.s32.totalorder %s58_s18, %s476_s0  ;;  %p482_p3 = scmp.lt.s32.totalorder %s476_s0, %s476_s0 }
  0x28   :  { %p483_p4 = por %p482_p3, %p481_p2 }
  0x2a   :  { %p484_p5 = pnand %p483_p4, %p477_p1 }
  0x2c   :  { %487 = shalt.err (!%p484_p5)
}
  0x2d   :  { %63 = dma.hbm_to_vmem [thread:$0]  %s596_s5, 512, %s58_s18, [#allocation9], %s519_s1, %s519_s1, %s520_s14  }
  0x2e   :  { %508 = dma.done.wait [#allocation3], 128  }
  0x2f   :  { %509 = vsyncadd [#allocation3], 4294967168 }
  0x30   :  { %510 = dma.done.wait [#allocation6], 640  }
  0x31   :  { %511 = vsyncadd [#allocation6], 4294966656 }
  0x32   :  { %512 = dma.done.wait [#allocation9], 512  }
  0x33   :  { %513 = vsyncadd [#allocation9], 4294966784  ;;  %v522_v0 = vmov 0.0   ;;  %vm523_vm0 = vmmov 0   ;;  %vm87_vm1 = vcmask 64512   ;;  %v79_v1 = vld [vmem:[#allocation5] sm:$0xff] }
  0x34   :  { %368 = vmatprep.subr.mxu0 %v522_v0  ;;  %370 = vmatprep.mubr.msk.f32.mxu0 %vm523_vm0, %v522_v0  ;;  %v78_v2 = vld [vmem:[#allocation2] sm:$0xff]  ;;  %v165_v3 = vld [vmem:[#allocation7 + $0x18] sm:$0xff]  ;;  %v163_v5 = vld [vmem:[#allocation7 + $0x8] sm:$0xff]  ;;  %vm173_vm2 = vcmask 261120   ;;  %s524_s24 = smov [#allocation10]  }
  0x35   :  { %373 = vmatprep.subr.mxu1 %v522_v0  ;;  %381 = vmatprep.mubr.msk.f32.mxu1 %vm523_vm0, %v522_v0  ;;  %v164_v4 = vld [vmem:[#allocation7 + $0x10] sm:$0xff]  ;;  %v162_v6 = vld [vmem:[#allocation7] sm:$0xff]  ;;  %v251_v12 = vld [vmem:[#allocation8 + $0x18] sm:$0xff]  ;;  %s339_s25 = sshll.u32 %s524_s24, 4  ;;  %s340_s25 = int_to_ptr.vmem [resolvable:$true] %s339_s25 }
  0x36   :  { %369 = vmatpush3.msra.mxu0 %v79_v1  ;;  %374 = vmatpush3.msra.mxu1 %v165_v3  ;;  %v350_v7 = vld [vmem:[%s593_s2] ss:$0 sm:$0xff]  ;;  %v249_v14 = vld [vmem:[#allocation8 + $0x8] sm:$0xff]  ;;  %v248_v15 = vld [vmem:[#allocation8] sm:$0xff]  ;;  %s488_s26 = scalar_lea.vmem %s340_s25, 128  ;;  %p493_p7 = scmp.lt.s32.totalorder %s340_s25, %s340_s25 }
  0x37   :  { %371 = vmatmul.mubr.msk.f32.vlgmr.msra.gmra.mxu0 %vm87_vm1, %v78_v2  ;;  %384 = vmatprep.subr.mxu0 %v522_v0  ;;  %v250_v13 = vld [vmem:[#allocation8 + $0x10] sm:$0xff]  ;;  %p489_p6 = scmp.ne.s32.totalorder %s340_s25, %s488_s26  ;;  %p494_p8 = scmp.lt.s32.totalorder %s488_s26, %s488_s26 }
  0x38   :  { %392 = vmatprep.mubr.msk.f32.mxu0 %vm523_vm0, %v522_v0  ;;  %375 = vmatprep.subr.mxu1 %v522_v0  ;;  %v352_v16 = vld [vmem:[%s595_s4] ss:$0 sm:$0xff] }
  0x39   :  { %376 = vmatpush3.msra.mxu1 %v164_v4  ;;  %385 = vmatpush3.msra.mxu0 %v251_v12  ;;  %v354_v21 = vld [vmem:[%s597_s6] ss:$0 sm:$0xff]  ;;  %p495_p9 = por %p494_p8, %p493_p7 }
  0x3a   :  { %377 = vmatprep.subr.mxu1 %v522_v0  ;;  %386 = vmatprep.subr.mxu0 %v522_v0 }
  0x3b   :  { %378 = vmatpush3.msra.mxu1 %v163_v5  ;;  %387 = vmatpush3.msra.mxu0 %v250_v13  ;;  %p496_p10 = pnand %p495_p9, %p489_p6 }
  0x3c   :  { %379 = vmatprep.subr.mxu1 %v522_v0  ;;  %388 = vmatprep.subr.mxu0 %v522_v0 }
  0x3d   :  { %380 = vmatpush3.msra.mxu1 %v162_v6  ;;  %389 = vmatpush3.msra.mxu0 %v249_v14 }
  0x3e   :  { %390 = vmatprep.subr.mxu0 %v522_v0 }
  0x3f   :  { %391 = vmatpush3.msra.mxu0 %v248_v15 }
  0xf7   :  { %v157_v8 = vpop.f32.mrf.mxu0 }
  0xf8   :  { %v158_v9 = vadd.f32 %v350_v7, %v157_v8 }
  0xf9   :  { %v372_v10 = vpop.f32.mrf.mxu0 }
  0xfa   :  { %404 = vtanh.f32 %v158_v9 }
 0x107   :  { %v405_v11 = vpop.eup %404 }
 0x108   :  { %382 = vmatmul.mubr.msk.f32.vlgmr.msra.gmra.mxu1 %vm173_vm2, %v405_v11 }
 0x1c8   :  { %v243_v17 = vpop.f32.mrf.mxu1 }
 0x1c9   :  { %v244_v18 = vadd.f32 %v352_v16, %v243_v17 }
 0x1ca   :  { %v383_v19 = vpop.f32.mrf.mxu1 }
 0x1cb   :  { %406 = vtanh.f32 %v244_v18 }
 0x1d8   :  { %v407_v20 = vpop.eup %406 }
 0x1d9   :  { %393 = vmatmul.mubr.msk.f32.vlgmr.msra.gmra.mxu0 %vm173_vm2, %v407_v20 }
 0x299   :  { %v328_v22 = vpop.f32.mrf.mxu0 }
 0x29a   :  { %v329_v23 = vadd.f32 %v354_v21, %v328_v22 }
 0x29b   :  { %v394_v24 = vpop.f32.mrf.mxu0 }
 0x29c   :  { %332 = vst [vmem:[#allocation10] sm:$0xff] %v329_v23 }
 0x29d   :  { %499 = shalt.err (!%p496_p10)
}
 0x29e   :  { %342 = dma.vmem_to_hbm [thread:$0]  %s340_s25, 128, %s598_s7, [#allocation4]  }
 0x29f   :  { %514 = dma.done.wait [#allocation4], 128  }
 0x2a0   :  { %515 = vsyncadd [#allocation4], 4294967168 }
 0x2a1   :  { %346 = vsyncpa [#allocation3], 1 }
 0x2a2   :  { %347 = vsyncpa [#allocation6], 1 }
 0x2a3   :  { %348 = vsyncpa [#allocation9], 1 }
 0x2a4   :  { %349 = vsyncpa [#allocation4], 1 }

</bundles_post_ra>
